<compile_context>
chip_gen: v7x
topology: tpu7x:2x2x1
jax: 0.10.0
libtpu: 0.0.40
codegen_flags: <defaults>
</compile_context>

<pallas_src>
import jax
import jax.numpy as jnp
from jax.experimental import pallas as pl
from jax.experimental.pallas import tpu as pltpu

TB_MAX = 2048  # packed rows per tile; (2048,128) f32 = 1 MiB/buffer, well under VMEM limits


def _choose_pack(d: int) -> int:
    """Pick how many logical rows to pack per physical row so PACK*D is lane-friendly."""
    if d >= 128:
        return 1                    # already lane-dense enough
    if 128 % d == 0:
        return 128 // d             # exactly one full vreg lane width
    for p in (8, 4, 2):
        if (p * d) % 8 == 0:
            return p
    return 1


def _mlp_kernel(x_ref, w1_ref, b1_ref, w2_ref, b2_ref, o_ref):
    # Fused fc1 -> relu -> fc2 -> sigmoid on one batch tile (packed layout).
    x = x_ref[...]
    h = jnp.dot(x, w1_ref[...], preferred_element_type=jnp.float32) + b1_ref[...]
    h = jnp.maximum(h, 0.0)
    z = jnp.dot(h, w2_ref[...], preferred_element_type=jnp.float32) + b2_ref[...]
    o_ref[...] = jax.nn.sigmoid(z).astype(o_ref.dtype)


def mlp_2l_2n(x, params):
    """Pallas forward for MLP_2L_2n.

    x: (B, input_dim) float32
    params: dict with w1 (D,2), b1 (1,2), w2 (2,1), b2 (1,1)
    returns: (B, 1) float32
    """
    B, D = x.shape
    w1, b1 = params["w1"], params["b1"]
    w2, b2 = params["w2"], params["b2"]
    H = w1.shape[1]  # 2
    O = w2.shape[1]  # 1

    P = _choose_pack(D)

    # Packed rows, sublane-aligned tile size, and padded packed-row count.
    R = -(-B // P)                               # packed rows needed
    TB = min(TB_MAX, ((R + 7) // 8) * 8)         # sublane-aligned (multiple of 8)
    Rp = ((R + TB - 1) // TB) * TB               # pad packed rows to tile multiple
    pad_rows = Rp * P - B
    if pad_rows:
        x = jnp.pad(x, ((0, pad_rows), (0, 0)))
    xp = x.reshape(Rp, P * D)                    # contiguous reshape (no data movement)

    # Block-diagonal packed weights / tiled biases (built once in the wrapper).
    eye = jnp.eye(P, dtype=x.dtype)
    w1p = jnp.kron(eye, w1)                      # (P*D, P*H)
    w2p = jnp.kron(eye, w2)                      # (P*H, P*O)
    b1p = jnp.tile(b1, (1, P))                   # (1, P*H)
    b2p = jnp.tile(b2, (1, P))                   # (1, P*O)

    def const(a):                                # resident in VMEM across the whole grid
        return pl.BlockSpec(a.shape, lambda i: (0, 0))

    out = pl.pallas_call(
        _mlp_kernel,
        out_shape=jax.ShapeDtypeStruct((Rp, P * O), jnp.float32),
        grid=(pl.cdiv(Rp, TB),),
        in_specs=[
            pl.BlockSpec((TB, P * D), lambda i: (i, 0)),  # streamed, double-buffered batch tile
            const(w1p), const(b1p), const(w2p), const(b2p),
        ],
        out_specs=pl.BlockSpec((TB, P * O), lambda i: (i, 0)),
        compiler_params=pltpu.CompilerParams(
            dimension_semantics=("parallel",),   # shard batch axis across TCs (v7x megacore)
        ),
    )(xp, w1p, b1p, w2p, b2p)

    return out.reshape(Rp * P, O)[:B]


def init_params(key, input_dim):
    """Deterministic init mimicking nn.Linear's U(-1/sqrt(fan_in), +1/sqrt(fan_in))."""
    ks = jax.random.split(key, 4)

    def linear(kw, kb, fan_in, fan_out):
        bound = 1.0 / jnp.sqrt(fan_in)
        w = jax.random.uniform(kw, (fan_in, fan_out), jnp.float32, -bound, bound)
        b = jax.random.uniform(kb, (1, fan_out), jnp.float32, -bound, bound)
        return w, b

    w1, b1 = linear(ks[0], ks[1], input_dim, 2)
    w2, b2 = linear(ks[2], ks[3], 2, 1)
    return {"w1": w1, "b1": b1, "w2": w2, "b2": b2}


def _reference(x, p):
    h = jnp.maximum(x @ p["w1"] + p["b1"], 0.0)
    return jax.nn.sigmoid(h @ p["w2"] + p["b2"])


if __name__ == "__main__":
    key = jax.random.PRNGKey(0)
    k_x, k_p = jax.random.split(key)

    batch, input_dim = 8, 32
    x = jax.random.normal(k_x, (batch, input_dim), jnp.float32)
    params = init_params(k_p, input_dim)

    out = mlp_2l_2n(x, params)
    out = jax.block_until_ready(out)

    ref = _reference(x, params)
    assert out.shape == (batch, 1), out.shape
    assert jnp.allclose(out, ref, atol=1e-5, rtol=1e-5), float(jnp.max(jnp.abs(out - ref)))

    print("KERNEL_OK")
</pallas_src>

<mosaic_0001>
module attributes {stable_mosaic.version = 11 : i64} {
  func.func @_mlp_kernel(%arg0: i32, %arg1: memref<8x128xf32, #tpu.memory_space<vmem>>, %arg2: memref<128x8xf32, #tpu.memory_space<vmem>>, %arg3: memref<1x8xf32, #tpu.memory_space<vmem>>, %arg4: memref<8x4xf32, #tpu.memory_space<vmem>>, %arg5: memref<1x4xf32, #tpu.memory_space<vmem>>, %arg6: memref<8x4xf32, #tpu.memory_space<vmem>>) attributes {dimension_semantics = [#tpu.dimension_semantics<parallel>], iteration_bounds = array<i64: 1>, scalar_prefetch = 0 : i64, scratch_operands = 0 : i64, tpu.core_type = #tpu.core_type<tc>, window_params = [{transform_indices = @transform_0, window_bounds = array<i64: 8, 128>}, {pipeline_mode = #tpu.pipeline_mode<synchronous>, transform_indices = @transform_1, window_bounds = array<i64: 128, 8>}, {pipeline_mode = #tpu.pipeline_mode<synchronous>, transform_indices = @transform_2, window_bounds = array<i64: 1, 8>}, {pipeline_mode = #tpu.pipeline_mode<synchronous>, transform_indices = @transform_3, window_bounds = array<i64: 8, 4>}, {pipeline_mode = #tpu.pipeline_mode<synchronous>, transform_indices = @transform_4, window_bounds = array<i64: 1, 4>}, {transform_indices = @transform_5, window_bounds = array<i64: 8, 4>}]} {
    %c0 = arith.constant 0 : index
    %c0_0 = arith.constant 0 : index
    %0 = vector.load %arg1[%c0, %c0_0] : memref<8x128xf32, #tpu.memory_space<vmem>>, vector<8x128xf32>
    %c0_1 = arith.constant 0 : index
    %c0_2 = arith.constant 0 : index
    %1 = vector.load %arg2[%c0_1, %c0_2] : memref<128x8xf32, #tpu.memory_space<vmem>>, vector<128x8xf32>
    %cst = arith.constant dense<0.000000e+00> : vector<8x8xf32>
    %2 = tpu.matmul %0, %1, %cst {dimension_numbers = #tpu.dot_dimension_numbers<[1], [0], [0], [1], [0, 0, 1, 1], [], []>} : vector<8x128xf32>, vector<128x8xf32>, vector<8x8xf32> -> vector<8x8xf32>
    %c0_3 = arith.constant 0 : index
    %c0_4 = arith.constant 0 : index
    %3 = vector.load %arg3[%c0_3, %c0_4] : memref<1x8xf32, #tpu.memory_space<vmem>>, vector<1x8xf32>
    %4 = vector.broadcast %3 : vector<1x8xf32> to vector<8x8xf32>
    %5 = arith.addf %2, %4 : vector<8x8xf32>
    %cst_5 = arith.constant 0.000000e+00 : f32
    %6 = vector.broadcast %cst_5 : f32 to vector<8x8xf32>
    %7 = arith.maximumf %5, %6 : vector<8x8xf32>
    %c0_6 = arith.constant 0 : index
    %c0_7 = arith.constant 0 : index
    %8 = vector.load %arg4[%c0_6, %c0_7] : memref<8x4xf32, #tpu.memory_space<vmem>>, vector<8x4xf32>
    %cst_8 = arith.constant dense<0.000000e+00> : vector<8x4xf32>
    %9 = tpu.matmul %7, %8, %cst_8 {dimension_numbers = #tpu.dot_dimension_numbers<[1], [0], [0], [1], [0, 0, 1, 1], [], []>} : vector<8x8xf32>, vector<8x4xf32>, vector<8x4xf32> -> vector<8x4xf32>
    %c0_9 = arith.constant 0 : index
    %c0_10 = arith.constant 0 : index
    %10 = vector.load %arg5[%c0_9, %c0_10] : memref<1x4xf32, #tpu.memory_space<vmem>>, vector<1x4xf32>
    %11 = vector.broadcast %10 : vector<1x4xf32> to vector<8x4xf32>
    %12 = arith.addf %9, %11 : vector<8x4xf32>
    %13 = arith.negf %12 : vector<8x4xf32>
    %14 = math.exp %13 : vector<8x4xf32>
    %cst_11 = arith.constant 1.000000e+00 : f32
    %15 = vector.broadcast %cst_11 : f32 to vector<8x4xf32>
    %16 = arith.addf %15, %14 : vector<8x4xf32>
    %17 = arith.divf %15, %16 : vector<8x4xf32>
    %c0_12 = arith.constant 0 : index
    %c0_13 = arith.constant 0 : index
    %18 = vector.load %arg6[%c0_12, %c0_13] : memref<8x4xf32, #tpu.memory_space<vmem>>, vector<8x4xf32>
    tpu.vector_store %arg6[%c0_12, %c0_13], %17 {strides = array<i32>} : memref<8x4xf32, #tpu.memory_space<vmem>>, vector<8x4xf32>,
    return
  }
  func.func @transform_0(%arg0: i32) -> (i32, i32) {
    %c0_i32 = arith.constant 0 : i32
    %c0_i32_0 = arith.constant 0 : i32
    return %arg0, %c0_i32 : i32, i32
  }
  func.func @transform_1(%arg0: i32) -> (i32, i32) {
    %c0_i32 = arith.constant 0 : i32
    %c0_i32_0 = arith.constant 0 : i32
    %c0_i32_1 = arith.constant 0 : i32
    return %c0_i32, %c0_i32_0 : i32, i32
  }
  func.func @transform_2(%arg0: i32) -> (i32, i32) {
    %c0_i32 = arith.constant 0 : i32
    %c0_i32_0 = arith.constant 0 : i32
    %c0_i32_1 = arith.constant 0 : i32
    return %c0_i32, %c0_i32_0 : i32, i32
  }
  func.func @transform_3(%arg0: i32) -> (i32, i32) {
    %c0_i32 = arith.constant 0 : i32
    %c0_i32_0 = arith.constant 0 : i32
    %c0_i32_1 = arith.constant 0 : i32
    return %c0_i32, %c0_i32_0 : i32, i32
  }
  func.func @transform_4(%arg0: i32) -> (i32, i32) {
    %c0_i32 = arith.constant 0 : i32
    %c0_i32_0 = arith.constant 0 : i32
    %c0_i32_1 = arith.constant 0 : i32
    return %c0_i32, %c0_i32_0 : i32, i32
  }
  func.func @transform_5(%arg0: i32) -> (i32, i32) {
    %c0_i32 = arith.constant 0 : i32
    %c0_i32_0 = arith.constant 0 : i32
    return %arg0, %c0_i32 : i32, i32
  }
}

</mosaic_0001>

<bundles_post_ra>
// kernel: tpu_custom_call.1
= control target key start
LH: loop header
LB: loop body
LE: loop exit
PB: predicated region body
PF: predicated region fallthrough
CT: control target
= control target key end

     0   :  { %v303_v0 = vmov 0.0|0.0   ;;  %vm304_vm0 = vmmov 0   ;;  %v305_v4 = vmov 0.0   ;;  %vm123_vm1 = vcmask 64512   ;;  %s399_s1 = inlined_call_operand.vmem [shape: f32[128,8], index: 1, kind: input, shape index: {}]   ;;  %s400_s0 = inlined_call_operand.vmem [shape: f32[8,128], index: 0, kind: input, shape index: {}]   ;;  %s401_s3 = inlined_call_operand.vmem [shape: f32[8,4], index: 3, kind: input, shape index: {}]   ;;  %s402_s2 = inlined_call_operand.vmem [shape: f32[1,8], index: 2, kind: input, shape index: {}]   ;;  %s403_s4 = inlined_call_operand.vmem [shape: f32[1,4], index: 4, kind: input, shape index: {}]   ;;  %s404_s5 = inlined_call_operand.vmem [shape: f32[8,4], index: 5, kind: output, shape index: {}]  }
   0x1   :  { %272 = vmatprep.subr.bf16.mxu0 %v303_v0  ;;  %v21_v1 = vld [vmem:[%s399_s1] sm:$0xff]  ;;  %v22_v2 = vld [vmem:[%s399_s1 + $0x8] sm:$0xff]  ;;  %v23_v3 = vld [vmem:[%s399_s1 + $0x10] sm:$0xff]  ;;  %264 = vmatprep.mubr.msk.f32.mxu0 %vm304_vm0, %v305_v4  ;;  %vm203_vm2 = vcmask 31744  }
   0x2   :  { %v273_v5 = vpack.c.bf16 %v22_v2, %v21_v1  ;;  %v24_v6 = vld [vmem:[%s399_s1 + $0x18] sm:$0xff]  ;;  %267 = vmatprep.subr.mxu1 %v305_v4  ;;  %269 = vmatprep.mubr.msk.f32.mxu1 %vm304_vm0, %v305_v4  ;;  %v25_v8 = vld [vmem:[%s399_s1 + $0x20] sm:$0xff]  ;;  %v26_v9 = vld [vmem:[%s399_s1 + $0x28] sm:$0xff] }
   0x3   :  { %v276_v7 = vpack.c.bf16 %v24_v6, %v23_v3  ;;  %v279_v10 = vpack.c.bf16 %v26_v9, %v25_v8  ;;  %v27_v11 = vld [vmem:[%s399_s1 + $0x30] sm:$0xff]  ;;  %v28_v12 = vld [vmem:[%s399_s1 + $0x38] sm:$0xff]  ;;  %v29_v14 = vld [vmem:[%s399_s1 + $0x40] sm:$0xff] }
   0x4   :  { %274 = vmatpush3.bf16.msra.mxu0 %v273_v5  ;;  %v282_v13 = vpack.c.bf16 %v28_v12, %v27_v11  ;;  %v30_v15 = vld [vmem:[%s399_s1 + $0x48] sm:$0xff]  ;;  %v31_v17 = vld [vmem:[%s399_s1 + $0x50] sm:$0xff]  ;;  %v32_v18 = vld [vmem:[%s399_s1 + $0x58] sm:$0xff] }
   0x5   :  { %275 = vmatprep.subr.bf16.mxu0 %v303_v0  ;;  %v285_v16 = vpack.c.bf16 %v30_v15, %v29_v14  ;;  %v288_v19 = vpack.c.bf16 %v32_v18, %v31_v17  ;;  %v33_v20 = vld [vmem:[%s399_s1 + $0x60] sm:$0xff]  ;;  %v34_v21 = vld [vmem:[%s399_s1 + $0x68] sm:$0xff]  ;;  %v35_v23 = vld [vmem:[%s399_s1 + $0x70] sm:$0xff] }
   0x6   :  { %v291_v22 = vpack.c.bf16 %v34_v21, %v33_v20  ;;  %v36_v24 = vld [vmem:[%s399_s1 + $0x78] sm:$0xff]  ;;  %v20_v26 = vld [vmem:[%s400_s0] sm:$0xff] }
   0x7   :  { %v294_v25 = vpack.c.bf16 %v36_v24, %v35_v23  ;;  %v115_v27 = vld [vmem:[%s401_s3] sm:$0xff] }
   0x8   :  { %277 = vmatpush3.bf16.msra.mxu0 %v276_v7  ;;  %268 = vmatpush3.msra.mxu1 %v115_v27  ;;  %v209_v28 = vld [vmem:[%s402_s2] ss:$0 sm:$0xff] }
   0x9   :  { %278 = vmatprep.subr.bf16.mxu0 %v303_v0  ;;  %v210_v33 = vld [vmem:[%s403_s4] ss:$0 sm:$0xff] }
   0xc   :  { %280 = vmatpush3.bf16.msra.mxu0 %v279_v10 }
   0xd   :  { %281 = vmatprep.subr.bf16.mxu0 %v303_v0 }
  0x10   :  { %283 = vmatpush3.bf16.msra.mxu0 %v282_v13 }
  0x11   :  { %284 = vmatprep.subr.bf16.mxu0 %v303_v0 }
  0x14   :  { %286 = vmatpush3.bf16.msra.mxu0 %v285_v16 }
  0x15   :  { %287 = vmatprep.subr.bf16.mxu0 %v303_v0 }
  0x18   :  { %289 = vmatpush3.bf16.msra.mxu0 %v288_v19 }
  0x19   :  { %290 = vmatprep.subr.bf16.mxu0 %v303_v0 }
  0x1c   :  { %292 = vmatpush3.bf16.msra.mxu0 %v291_v22 }
  0x1d   :  { %293 = vmatprep.subr.bf16.mxu0 %v303_v0 }
  0x20   :  { %295 = vmatpush3.bf16.msra.mxu0 %v294_v25 }
  0x23   :  { %265 = vmatmul.mubr.f32.vlgmr.msra.gmra.mrb[0].mxu0 %v20_v26 }
  0xf6   :  { %v110_v29 = vpop.f32.mrb[0].mxu0 }
  0xf7   :  { %v111_v30 = vadd.f32 %v209_v28, %v110_v29  ;;  %v266_v31 = vpop.f32.mrb[1].mxu0 }
  0xf9   :  { %v114_v32 = vmax.f32 %v111_v30, 0.0 }
  0xfb   :  { %270 = vmatmul.mubr.msk.f32.vlgmr.msra.gmra.mrb[0].mxu1 %vm123_vm1, %v114_v32 }
 0x1ce   :  { %v193_v34 = vpop.f32.mrb[0].mxu1 }
 0x1cf   :  { %v194_v35 = vadd.f32 %v210_v33, %v193_v34  ;;  %v271_v36 = vpop.f32.mrb[1].mxu1 }
 0x1d1   :  { %v212_v37 = vmul.f32 -1.442695, %v194_v35 }
 0x1d3   :  { %299 = vpow2.f32 %v212_v37 }
 0x1dd   :  { %v300_v38 = vpop.eup %299 }
 0x1de   :  { %v200_v39 = vadd.f32 1.0, %v300_v38 }
 0x1e0   :  { %301 = vrcp.f32 %v200_v39 }
 0x1ea   :  { %v302_v40 = vpop.eup %301 }
 0x1eb   :  { %204 = vst.msk [vmem:[%s404_s5] sm:$0xff] %vm203_vm2, %v302_v40 }

</bundles_post_ra>
